<compile_context>
chip_gen: v5e
topology: v5e:2x2
jax: 0.10.0
libtpu: 0.0.40
codegen_flags: <defaults>
</compile_context>

<pallas_src>
import functools

import jax
import jax.numpy as jnp
from jax.experimental import pallas as pl
from jax.experimental.pallas import tpu as pltpu

OUT_LANES = 128  # lane-dense padded regression head; column 0 is the real output


# ----------------------------------------------------------------------------
# Kernel. grid = (B, HW // TM); m (inner axis) is the pooling reduction.
#   scale : (B,)          f32  SMEM   aux input (num_aux_inputs = 1)
#   x_col : (B*HW, KPAD)  bf16        im2col'd image, tiled (TM, KPAD) per step
#   w_col : (KPAD, Cf)    bf16        conv weights (K zero-padded to 128)
#   bconv : (1, Cf)       f32
#   w1f   : (Cf, F)       bf16        first Linear, feature columns
#   w1s   : (1, F)        f32         first Linear, `scale` row (epilogue)
#   b1    : (1, F)        f32
#   w2p   : (F, 128)      bf16        second Linear, zero-padded to 128 lanes
#   b2p   : (1, 128)      f32
#   out   : (B, 128)      f32         resident lane-dense slab; col 0 is the result
#   acc   : (1, Cf)       f32  VMEM   running pool accumulator (scratch)
# ----------------------------------------------------------------------------
def camnet_kernel(scale_ref, xcol_ref, wcol_ref, bconv_ref,
                  w1f_ref, w1s_ref, b1_ref, w2_ref, b2_ref,
                  out_ref, acc_ref, *, inv_hw):
    b = pl.program_id(0)
    m = pl.program_id(1)

    @pl.when(m == 0)
    def _():
        acc_ref[...] = jnp.zeros_like(acc_ref)

    # conv-as-matmul on this M tile: bf16 operands -> single MXU pass, f32 acc
    t = jnp.dot(xcol_ref[...], wcol_ref[...],
                preferred_element_type=jnp.float32)            # (TM, Cf) f32
    t = jnp.maximum(t + bconv_ref[...], 0.0)                   # f32 epilogue (v5e-safe)

    # global-average-pool partial sum: sublane reduce, no dense pooling matmul
    acc_ref[...] += jnp.sum(t, axis=0, keepdims=True)          # (1, Cf)

    @pl.when(m == pl.num_programs(1) - 1)
    def _():
        feats = acc_ref[...] * inv_hw                          # (1, Cf) f32
        h = jnp.dot(feats.astype(jnp.bfloat16), w1f_ref[...],
                    preferred_element_type=jnp.float32)        # (1, F) f32
        # `scale` folded in as a rank-1 update (== concat([feats, scale]) @ w1)
        h = jnp.maximum(h + scale_ref[b] * w1s_ref[...] + b1_ref[...], 0.0)
        # TODO(synk): Dropout is eval-mode identity here (no PRNG masking).
        o = jnp.dot(h.astype(jnp.bfloat16), w2_ref[...],
                    preferred_element_type=jnp.float32) + b2_ref[...]
        out_ref[pl.ds(b, 1), :] = o.astype(out_ref.dtype)      # lane-dense row write


# ----------------------------------------------------------------------------
# Plain-JAX glue
# ----------------------------------------------------------------------------
def _im2col_3x3_same_bf16(x_nhwc):
    """(B, H, W, C) f32 -> (B*H*W, 9*C) bf16 for a stride-1 3x3 'same' conv."""
    B, H, W, C = x_nhwc.shape
    xb = x_nhwc.astype(jnp.bfloat16)          # cast BEFORE pad/stack (halves HBM blow-up)
    xp = jnp.pad(xb, ((0, 0), (1, 1), (1, 1), (0, 0)))
    cols = [xp[:, kh:kh + H, kw:kw + W, :] for kh in range(3) for kw in range(3)]
    col = jnp.stack(cols, axis=3)             # (B, H, W, 9, C) bf16
    return col.reshape(B * H * W, 9 * C)


def _pick_tm(hw):
    """>=256-row M tiles (fills v6e/v7x 256-wide MXU) with >=2 steps when HW allows."""
    for cand in (512, 256, 128):
        if hw % cand == 0 and hw // cand >= 2:
            return cand
    for cand in (512, 256, 128):
        if hw % cand == 0:
            return cand
    return hw


@jax.jit
def camnet_regressor_forward(image_nchw, scale, params):
    """Returns (zeros_like(regression_output), regression_output), like the PyTorch module."""
    conv_w = params["conv_w"]            # (3, 3, Cin, Cf)
    conv_b = params["conv_b"]            # (Cf,)
    w1, b1 = params["w1"], params["b1"]  # (Cf+1, F), (F,)
    w2, b2 = params["w2"], params["b2"]  # (F, 1), (1,)

    B, Cin, H, W = image_nchw.shape
    HW = H * W
    Cf = conv_w.shape[-1]
    F = w1.shape[-1]
    K = 9 * Cin
    KPAD = max(128, ((K + 127) // 128) * 128)

    tm = _pick_tm(HW)
    nmt = HW // tm

    x_nhwc = jnp.transpose(image_nchw, (0, 2, 3, 1))             # NCHW -> NHWC
    x_col = _im2col_3x3_same_bf16(x_nhwc)                        # (B*HW, K) bf16
    x_col = jnp.pad(x_col, ((0, 0), (0, KPAD - K)))              # 128-lane-align K

    w_col = jnp.pad(conv_w.reshape(K, Cf).astype(jnp.bfloat16),
                    ((0, KPAD - K), (0, 0)))                     # (KPAD, Cf) bf16
    b_col = conv_b.reshape(1, Cf).astype(jnp.float32)

    w1f = w1[:Cf, :].astype(jnp.bfloat16)                        # (Cf, F) bf16 MXU operand
    w1s = w1[Cf:Cf + 1, :].astype(jnp.float32)                   # (1, F)  f32 epilogue
    b1r = b1.reshape(1, F).astype(jnp.float32)
    w2p = jnp.zeros((F, OUT_LANES), jnp.float32).at[:, 0:1].set(w2).astype(jnp.bfloat16)
    b2p = jnp.zeros((1, OUT_LANES), jnp.float32).at[:, 0:1].set(b2.reshape(1, 1))

    kernel = functools.partial(camnet_kernel, inv_hw=1.0 / HW)
    const = lambda b, m: (0, 0)

    out_pad = pl.pallas_call(
        kernel,
        out_shape=jax.ShapeDtypeStruct((B, OUT_LANES), jnp.float32),
        grid_spec=pltpu.PrefetchScalarGridSpec(
            num_scalar_prefetch=0,
            grid=(B, nmt),                                       # m (reduction) axis last
            in_specs=[
                pl.BlockSpec(memory_space=pltpu.MemorySpace.SMEM),          # scale (B,)
                pl.BlockSpec((tm, KPAD), lambda b, m: (b * nmt + m, 0)),    # x_col tile
                pl.BlockSpec((KPAD, Cf), const),                            # w_col (resident)
                pl.BlockSpec((1, Cf), const),                               # conv bias
                pl.BlockSpec((Cf, F), const),                               # w1f
                pl.BlockSpec((1, F), const),                                # w1s
                pl.BlockSpec((1, F), const),                                # b1
                pl.BlockSpec((F, OUT_LANES), const),                        # w2 (padded)
                pl.BlockSpec((1, OUT_LANES), const),                        # b2 (padded)
            ],
            out_specs=pl.BlockSpec((B, OUT_LANES), const),       # resident output slab
            scratch_shapes=[pltpu.VMEM((1, Cf), jnp.float32)],   # pool accumulator
        ),
        compiler_params=pltpu.CompilerParams(
            dimension_semantics=("arbitrary", "arbitrary")),
    )(scale.reshape(B).astype(jnp.float32),
      x_col, w_col, b_col, w1f, w1s, b1r, w2p, b2p)

    reg_out = out_pad[:, :1]                                     # (B, 1)
    return jnp.zeros_like(reg_out), reg_out


def _reference_forward(image_nchw, scale, params):
    """Pure-JAX f32 reference of the same synthetic forward pass."""
    x = jnp.transpose(image_nchw, (0, 2, 3, 1))
    y = jax.lax.conv_general_dilated(
        x, params["conv_w"], window_strides=(1, 1), padding="SAME",
        dimension_numbers=("NHWC", "HWIO", "NHWC"))
    y = jnp.maximum(y + params["conv_b"], 0.0)
    feats = jnp.mean(y, axis=(1, 2))                             # (B, Cf)
    z = jnp.concatenate([feats, scale.reshape(-1, 1)], axis=1)   # (B, Cf+1)
    h = jnp.maximum(z @ params["w1"] + params["b1"], 0.0)
    return h @ params["w2"] + params["b2"]                       # (B, 1)


def init_params(key, cin, cf, feat):
    """Deterministic synthetic parameters (shapes implied by the module __init__)."""
    ks = jax.random.split(key, 6)
    s0 = 1.0 / jnp.sqrt(9.0 * cin)
    s1 = 1.0 / jnp.sqrt(float(cf + 1))
    s2 = 1.0 / jnp.sqrt(float(feat))
    return {
        "conv_w": jax.random.normal(ks[0], (3, 3, cin, cf), jnp.float32) * s0,
        "conv_b": jax.random.normal(ks[1], (cf,), jnp.float32) * s0,
        "w1": jax.random.normal(ks[2], (cf + 1, feat), jnp.float32) * s1,
        "b1": jax.random.normal(ks[3], (feat,), jnp.float32) * s1,
        "w2": jax.random.normal(ks[4], (feat, 1), jnp.float32) * s2,
        "b2": jax.random.normal(ks[5], (1,), jnp.float32) * s2,
    }


if __name__ == "__main__":
    key = jax.random.PRNGKey(0)
    B, Cin, H, W = 2, 4, 32, 32   # small NCHW image batch (HW=1024 -> 2 reduction steps)
    Cf = 128                      # synthetic backbone feature_dim (lane-aligned)
    FEATURES = 128                # conf.FEATURES (lane-aligned)

    k_img, k_scale, k_params = jax.random.split(key, 3)
    image = jax.random.normal(k_img, (B, Cin, H, W), jnp.float32)   # NCHW, like PyTorch
    scale = jax.random.normal(k_scale, (B, 1), jnp.float32)         # num_aux_inputs = 1
    params = init_params(k_params, Cin, Cf, FEATURES)

    zeros_out, reg_out = camnet_regressor_forward(image, scale, params)
    jax.block_until_ready(reg_out)

    ref = _reference_forward(image, scale, params)
    assert zeros_out.shape == reg_out.shape == (B, 1)
    assert bool(jnp.all(zeros_out == 0.0))
    assert bool(jnp.all(jnp.isfinite(reg_out)))
    # bf16 MXU operands vs f32 reference: loose tolerance.
    assert bool(jnp.allclose(reg_out, ref, rtol=5e-2, atol=5e-2))
    print("KERNEL_OK")
</pallas_src>

<mosaic_0001>
module attributes {stable_mosaic.version = 11 : i64} {
  func.func @camnet_kernel(%arg0: i32, %arg1: i32, %arg2: memref<2xf32, #tpu.memory_space<smem>>, %arg3: memref<512x128xbf16, #tpu.memory_space<vmem>>, %arg4: memref<128x128xbf16, #tpu.memory_space<vmem>>, %arg5: memref<1x128xf32, #tpu.memory_space<vmem>>, %arg6: memref<128x128xbf16, #tpu.memory_space<vmem>>, %arg7: memref<1x128xf32, #tpu.memory_space<vmem>>, %arg8: memref<1x128xf32, #tpu.memory_space<vmem>>, %arg9: memref<128x128xbf16, #tpu.memory_space<vmem>>, %arg10: memref<1x128xf32, #tpu.memory_space<vmem>>, %arg11: memref<2x128xf32, #tpu.memory_space<vmem>>, %arg12: memref<1x128xf32, #tpu.memory_space<vmem>>) attributes {dimension_semantics = [#tpu.dimension_semantics<arbitrary>, #tpu.dimension_semantics<arbitrary>], iteration_bounds = array<i64: 2, 2>, scalar_prefetch = 0 : i64, scratch_operands = 1 : i64, tpu.core_type = #tpu.core_type<tc>, window_params = [{transform_indices = @transform_0, window_bounds = array<i64: 2>}, {transform_indices = @transform_1, window_bounds = array<i64: 512, 128>}, {pipeline_mode = #tpu.pipeline_mode<synchronous>, transform_indices = @transform_2, window_bounds = array<i64: 128, 128>}, {pipeline_mode = #tpu.pipeline_mode<synchronous>, transform_indices = @transform_3, window_bounds = array<i64: 1, 128>}, {pipeline_mode = #tpu.pipeline_mode<synchronous>, transform_indices = @transform_4, window_bounds = array<i64: 128, 128>}, {pipeline_mode = #tpu.pipeline_mode<synchronous>, transform_indices = @transform_5, window_bounds = array<i64: 1, 128>}, {pipeline_mode = #tpu.pipeline_mode<synchronous>, transform_indices = @transform_6, window_bounds = array<i64: 1, 128>}, {pipeline_mode = #tpu.pipeline_mode<synchronous>, transform_indices = @transform_7, window_bounds = array<i64: 128, 128>}, {pipeline_mode = #tpu.pipeline_mode<synchronous>, transform_indices = @transform_8, window_bounds = array<i64: 1, 128>}, {pipeline_mode = #tpu.pipeline_mode<synchronous>, transform_indices = @transform_9, window_bounds = array<i64: 2, 128>}]} {
    %c0_i32 = arith.constant 0 : i32
    %0 = arith.cmpi eq, %arg1, %c0_i32 : i32
    %1 = arith.extui %0 : i1 to i32
    %c0_i32_0 = arith.constant 0 : i32
    %2 = arith.cmpi ne, %1, %c0_i32_0 : i32
    scf.if %2 {
      %cst_13 = arith.constant 0.000000e+00 : f32
      %19 = vector.broadcast %cst_13 : f32 to vector<1x128xf32>
      %c0_14 = arith.constant 0 : index
      %c0_15 = arith.constant 0 : index
      %20 = vector.load %arg12[%c0_14, %c0_15] : memref<1x128xf32, #tpu.memory_space<vmem>>, vector<1x128xf32>
      tpu.vector_store %arg12[%c0_14, %c0_15], %19 {strides = array<i32>} : memref<1x128xf32, #tpu.memory_space<vmem>>, vector<1x128xf32>,
    } else {
    }
    %c0 = arith.constant 0 : index
    %c0_1 = arith.constant 0 : index
    %3 = vector.load %arg3[%c0, %c0_1] : memref<512x128xbf16, #tpu.memory_space<vmem>>, vector<512x128xbf16>
    %c0_2 = arith.constant 0 : index
    %c0_3 = arith.constant 0 : index
    %4 = vector.load %arg4[%c0_2, %c0_3] : memref<128x128xbf16, #tpu.memory_space<vmem>>, vector<128x128xbf16>
    %cst = arith.constant dense<0.000000e+00> : vector<512x128xf32>
    %5 = tpu.matmul %3, %4, %cst {dimension_numbers = #tpu.dot_dimension_numbers<[1], [0], [0], [1], [0, 0, 1, 1], [], []>} : vector<512x128xbf16>, vector<128x128xbf16>, vector<512x128xf32> -> vector<512x128xf32>
    %c0_4 = arith.constant 0 : index
    %c0_5 = arith.constant 0 : index
    %6 = vector.load %arg5[%c0_4, %c0_5] : memref<1x128xf32, #tpu.memory_space<vmem>>, vector<1x128xf32>
    %7 = vector.broadcast %6 : vector<1x128xf32> to vector<512x128xf32>
    %8 = arith.addf %5, %7 : vector<512x128xf32>
    %cst_6 = arith.constant 0.000000e+00 : f32
    %9 = vector.broadcast %cst_6 : f32 to vector<512x128xf32>
    %10 = arith.maximumf %8, %9 : vector<512x128xf32>
    %c0_7 = arith.constant 0 : index
    %c0_8 = arith.constant 0 : index
    %11 = vector.load %arg12[%c0_7, %c0_8] : memref<1x128xf32, #tpu.memory_space<vmem>>, vector<1x128xf32>
    %cst_9 = arith.constant dense<0.000000e+00> : vector<128xf32>
    %12 = vector.multi_reduction <add>, %10, %cst_9 [0] : vector<512x128xf32> to vector<128xf32>
    %13 = vector.shape_cast %12 : vector<128xf32> to vector<1x128xf32>
    %14 = arith.addf %11, %13 : vector<1x128xf32>
    %c0_10 = arith.constant 0 : index
    %c0_11 = arith.constant 0 : index
    %15 = vector.load %arg12[%c0_10, %c0_11] : memref<1x128xf32, #tpu.memory_space<vmem>>, vector<1x128xf32>
    tpu.vector_store %arg12[%c0_10, %c0_11], %14 {strides = array<i32>} : memref<1x128xf32, #tpu.memory_space<vmem>>, vector<1x128xf32>,
    %c1_i32 = arith.constant 1 : i32
    %16 = arith.cmpi eq, %arg1, %c1_i32 : i32
    %17 = arith.extui %16 : i1 to i32
    %c0_i32_12 = arith.constant 0 : i32
    %18 = arith.cmpi ne, %17, %c0_i32_12 : i32
    scf.if %18 {
      %c0_13 = arith.constant 0 : index
      %c0_14 = arith.constant 0 : index
      %19 = vector.load %arg12[%c0_13, %c0_14] : memref<1x128xf32, #tpu.memory_space<vmem>>, vector<1x128xf32>
      %cst_15 = arith.constant 9.765625E-4 : f32
      %20 = vector.broadcast %cst_15 : f32 to vector<1x128xf32>
      %21 = arith.mulf %19, %20 : vector<1x128xf32>
      %22 = arith.truncf %21 : vector<1x128xf32> to vector<1x128xbf16>
      %c0_16 = arith.constant 0 : index
      %c0_17 = arith.constant 0 : index
      %23 = vector.load %arg6[%c0_16, %c0_17] : memref<128x128xbf16, #tpu.memory_space<vmem>>, vector<128x128xbf16>
      %cst_18 = arith.constant dense<0.000000e+00> : vector<1x128xf32>
      %24 = tpu.matmul %22, %23, %cst_18 {dimension_numbers = #tpu.dot_dimension_numbers<[1], [0], [0], [1], [0, 0, 1, 1], [], []>} : vector<1x128xbf16>, vector<128x128xbf16>, vector<1x128xf32> -> vector<1x128xf32>
      %25 = arith.index_cast %arg0 : i32 to index
      %26 = memref.load %arg2[%25] : memref<2xf32, #tpu.memory_space<smem>>
      %c0_19 = arith.constant 0 : index
      %c0_20 = arith.constant 0 : index
      %27 = vector.load %arg7[%c0_19, %c0_20] : memref<1x128xf32, #tpu.memory_space<vmem>>, vector<1x128xf32>
      %28 = vector.broadcast %26 : f32 to vector<1x128xf32>
      %29 = arith.mulf %28, %27 : vector<1x128xf32>
      %30 = arith.addf %24, %29 : vector<1x128xf32>
      %c0_21 = arith.constant 0 : index
      %c0_22 = arith.constant 0 : index
      %31 = vector.load %arg8[%c0_21, %c0_22] : memref<1x128xf32, #tpu.memory_space<vmem>>, vector<1x128xf32>
      %32 = arith.addf %30, %31 : vector<1x128xf32>
      %cst_23 = arith.constant 0.000000e+00 : f32
      %33 = vector.broadcast %cst_23 : f32 to vector<1x128xf32>
      %34 = arith.maximumf %32, %33 : vector<1x128xf32>
      %35 = arith.truncf %34 : vector<1x128xf32> to vector<1x128xbf16>
      %c0_24 = arith.constant 0 : index
      %c0_25 = arith.constant 0 : index
      %36 = vector.load %arg9[%c0_24, %c0_25] : memref<128x128xbf16, #tpu.memory_space<vmem>>, vector<128x128xbf16>
      %cst_26 = arith.constant dense<0.000000e+00> : vector<1x128xf32>
      %37 = tpu.matmul %35, %36, %cst_26 {dimension_numbers = #tpu.dot_dimension_numbers<[1], [0], [0], [1], [0, 0, 1, 1], [], []>} : vector<1x128xbf16>, vector<128x128xbf16>, vector<1x128xf32> -> vector<1x128xf32>
      %c0_27 = arith.constant 0 : index
      %c0_28 = arith.constant 0 : index
      %38 = vector.load %arg10[%c0_27, %c0_28] : memref<1x128xf32, #tpu.memory_space<vmem>>, vector<1x128xf32>
      %39 = arith.addf %37, %38 : vector<1x128xf32>
      %40 = arith.index_cast %arg0 : i32 to index
      %c0_29 = arith.constant 0 : index
      %41 = vector.load %arg11[%40, %c0_29] : memref<2x128xf32, #tpu.memory_space<vmem>>, vector<1x128xf32>
      tpu.vector_store %arg11[%40, %c0_29], %39 {strides = array<i32>} : memref<2x128xf32, #tpu.memory_space<vmem>>, vector<1x128xf32>,
    } else {
    }
    return
  }
  func.func @transform_0(%arg0: i32, %arg1: i32) -> i32 {
    %c0_i32 = arith.constant 0 : i32
    %c0_i32_0 = arith.constant 0 : i32
    return %c0_i32 : i32
  }
  func.func @transform_1(%arg0: i32, %arg1: i32) -> (i32, i32) {
    %c2_i32 = arith.constant 2 : i32
    %0 = arith.muli %arg0, %c2_i32 : i32
    %1 = arith.addi %0, %arg1 : i32
    %c0_i32 = arith.constant 0 : i32
    %c0_i32_0 = arith.constant 0 : i32
    return %1, %c0_i32 : i32, i32
  }
  func.func @transform_2(%arg0: i32, %arg1: i32) -> (i32, i32) {
    %c0_i32 = arith.constant 0 : i32
    %c0_i32_0 = arith.constant 0 : i32
    %c0_i32_1 = arith.constant 0 : i32
    return %c0_i32, %c0_i32_0 : i32, i32
  }
  func.func @transform_3(%arg0: i32, %arg1: i32) -> (i32, i32) {
    %c0_i32 = arith.constant 0 : i32
    %c0_i32_0 = arith.constant 0 : i32
    %c0_i32_1 = arith.constant 0 : i32
    return %c0_i32, %c0_i32_0 : i32, i32
  }
  func.func @transform_4(%arg0: i32, %arg1: i32) -> (i32, i32) {
    %c0_i32 = arith.constant 0 : i32
    %c0_i32_0 = arith.constant 0 : i32
    %c0_i32_1 = arith.constant 0 : i32
    return %c0_i32, %c0_i32_0 : i32, i32
  }
  func.func @transform_5(%arg0: i32, %arg1: i32) -> (i32, i32) {
    %c0_i32 = arith.constant 0 : i32
    %c0_i32_0 = arith.constant 0 : i32
    %c0_i32_1 = arith.constant 0 : i32
    return %c0_i32, %c0_i32_0 : i32, i32
  }
  func.func @transform_6(%arg0: i32, %arg1: i32) -> (i32, i32) {
    %c0_i32 = arith.constant 0 : i32
    %c0_i32_0 = arith.constant 0 : i32
    %c0_i32_1 = arith.constant 0 : i32
    return %c0_i32, %c0_i32_0 : i32, i32
  }
  func.func @transform_7(%arg0: i32, %arg1: i32) -> (i32, i32) {
    %c0_i32 = arith.constant 0 : i32
    %c0_i32_0 = arith.constant 0 : i32
    %c0_i32_1 = arith.constant 0 : i32
    return %c0_i32, %c0_i32_0 : i32, i32
  }
  func.func @transform_8(%arg0: i32, %arg1: i32) -> (i32, i32) {
    %c0_i32 = arith.constant 0 : i32
    %c0_i32_0 = arith.constant 0 : i32
    %c0_i32_1 = arith.constant 0 : i32
    return %c0_i32, %c0_i32_0 : i32, i32
  }
  func.func @transform_9(%arg0: i32, %arg1: i32) -> (i32, i32) {
    %c0_i32 = arith.constant 0 : i32
    %c0_i32_0 = arith.constant 0 : i32
    %c0_i32_1 = arith.constant 0 : i32
    return %c0_i32, %c0_i32_0 : i32, i32
  }
}

</mosaic_0001>

<bundles_post_ra>
// kernel: camnet_regressor_forward.1
= control target key start
LH: loop header
LB: loop body
LE: loop exit
PB: predicated region body
PF: predicated region fallthrough
CT: control target
= control target key end

     0   :  { %14 = vsyncpa [#allocation4], 0  ;;  %s1702_s30 = smov 0   ;;  %s1704_s10 = smov 0   ;;  %s2053_s0 = inlined_call_operand.vmem [shape: f32[2], index: 0, kind: input, shape index: {}]   ;;  %s2054_s1 = inlined_call_operand.vmem [shape: bf16[2048,128], index: 1, kind: input, shape index: {}]   ;;  %s2055_s2 = inlined_call_operand.vmem [shape: bf16[128,128], index: 2, kind: input, shape index: {}]   ;;  %s2056_s3 = inlined_call_operand.vmem [shape: f32[1,128], index: 3, kind: input, shape index: {}]   ;;  %s2057_s4 = inlined_call_operand.vmem [shape: bf16[128,128], index: 4, kind: input, shape index: {}]   ;;  %s2058_s5 = inlined_call_operand.vmem [shape: f32[1,128], index: 5, kind: input, shape index: {}]   ;;  %s2059_s6 = inlined_call_operand.vmem [shape: f32[1,128], index: 6, kind: input, shape index: {}]   ;;  %s2060_s7 = inlined_call_operand.vmem [shape: bf16[128,128], index: 7, kind: input, shape index: {}]   ;;  %s2061_s8 = inlined_call_operand.vmem [shape: f32[1,128], index: 8, kind: input, shape index: {}]   ;;  %s2062_s9 = inlined_call_operand.vmem [shape: f32[2,128], index: 9, kind: output, shape index: {}]  }
   0x1   :  { %s1706_s11 = smov 0   ;;  %s1708_s12 = smov 0  }
   0x2   :  { %s1710_s13 = smov 0  }
   0x3 LB: > { %s1219_s14 = sadd.s32 4294967295, %s1648_s13   ;;  %s29_s15 = sadd.s32 1, %s1640_s11  ;;  %s1648_s13 = sphi %s1710_s13, %s20_s13   ;;  %s1644_s12 = sphi %s1708_s12, %s2066_s12   ;;  %s1640_s11 = sphi %s1706_s11, %s2065_s11   ;;  %s1636_s10 = sphi %s1704_s10, %s2064_s10   ;;  %s1632_s30 = sphi %s1702_s30, %s2063_s30  }
   0x4   : > { %p30_p0 = scmp.ge.s32.totalorder %s29_s15, 2  ;;  %s32_s16 = sadd.s32 1, %s1644_s12 }
   0x5   : > { %p1222_p1 = scmp.ge.s32.totalorder %s1648_s13, 1  ;;  %p256_p2 = scmp.lt.s32.totalorder %s1648_s13, 5 }
   0x6   : > { %s2068_s15 = smov (%p30_p0, %s29_s15), 0  ;;  %s2070_s16 = smov (!%p30_p0, %s32_s16), %s1644_s12 }
   0x7   : > { %p257_p3 = pnand %p1222_p1, %p256_p2  ;;  %p34_p4 = scmp.ge.s32.totalorder %s2070_s16, 2 }
   0x8   : > { %p1546_p5 = scmp.eq.s32.totalorder %s1219_s14, 0  ;;  %s268_s19 = sshll.u32 %s2053_s0, 4  ;;  %s269_s19 = int_to_ptr.vmem [resolvable:$true] %s268_s19 }
   0x9   : > { %p1542_p6 = pneg %p257_p3  ;;  %s2072_s16 = smov (%p34_p4, %s2070_s16), 0 }
   0xa   : > { %s1650_s20 = smov [#allocation3]   ;;  %315 = sbr.rel (%p257_p3) target bundleno = 723 (0x2d3), region = 56 }
   0xb   : > { %p1543_p7 = pnand %p1546_p5, %p1542_p6 }
   0xd   : > { %1545 = dma.vmem_to_smem (!%p1543_p7), %s269_s19, 16, %s1650_s20, [#allocation4]  }
   0xf   : > { %1627 = dma.done.wait (%p1546_p5), [#allocation4], 16  }
  0x10   : > { %1629 = vsyncadd (%p1546_p5), [#allocation4], 4294967280 }
  0x11   : > { %322 = sfence }
  0x12   : > { %s1227_s21 = sshll.u32 %s1636_s10, 1  ;;  %p1230_p9 = scmp.ne.s32.totalorder %s1632_s30, 0 }
  0x13   : > { %s351_s22 = sadd.s32 %s1632_s30, %s1227_s21 }
  0x14   : > { %s1228_s23 = sshll.u32 %s351_s22, 6 }
  0x15   : > { %p353_p8 = scmp.lt.s32.totalorder %s1228_s23, 255  ;;  %363 = sbr.rel (%p1230_p9) target bundleno = 28 (0x1c), region = 64 }
  0x17   : > { %s2074_s23 = smov (!%p353_p8, %s1228_s23), 255 }
  0x18   : > { %s1229_s24 = sshll.u32 %s2074_s23, 2 }
  0x19   : > { %s1745_s27 = scalar_lea.vmem %s2054_s1, %s1229_s24 }
  0x1a   : > { %v1651_v0 = vmov 0.0  }
  0x1b   : > { %364 = vst [vmem:[#allocation2] sm:$0x1] %v1651_v0 }
  0x1c PF: > { %v1497_v1 = vld [vmem:[%s2055_s2 + $0x38] sm:$0xff]  ;;  %v1496_v2 = vld [vmem:[%s2055_s2 + $0x30] sm:$0xff]  ;;  %v1495_v3 = vld [vmem:[%s2055_s2 + $0x28] sm:$0xff]  ;;  %p1391_p10 = scmp.ne.s32.totalorder %s1632_s30, 1 }
  0x1d   : > { %689 = vmatpush.bf16.msra.mxu0 %v1497_v1  ;;  %1514 = vmatpush.bf16.msra.mxu1 %v1497_v1  ;;  %v1494_v4 = vld [vmem:[%s2055_s2 + $0x20] sm:$0xff]  ;;  %v1493_v5 = vld [vmem:[%s2055_s2 + $0x18] sm:$0xff]  ;;  %v1492_v6 = vld [vmem:[%s2055_s2 + $0x10] sm:$0xff]  ;;  %s1017_s20 = sld [smem:[#allocation3 + %s1636_s10]] (!%p1391_p10)  ;;  %s1164_s29 = scalar_lea.vmem (!%p1391_p10), %s2062_s9, %s1636_s10 }
  0x1e   : > { %1515 = vmatpush.bf16.msra.mxu2 %v1497_v1  ;;  %1516 = vmatpush.bf16.msra.mxu3 %v1497_v1  ;;  %v1491_v7 = vld [vmem:[%s2055_s2 + $0x8] sm:$0xff]  ;;  %v1490_v8 = vld [vmem:[%s2055_s2] sm:$0xff]  ;;  %v1460_v14 = vld [vmem:[%s1745_s27 + $0x10] sm:$0xff] }
  0x1f   : > { %v1458_v9 = vld [vmem:[%s1745_s27] sm:$0xff]  ;;  %v1459_v11 = vld [vmem:[%s1745_s27 + $0x8] sm:$0xff]  ;;  %v1468_v15 = vld [vmem:[%s1745_s27 + $0x50] sm:$0xff] }
  0x20   : > { %v1466_v10 = vld [vmem:[%s1745_s27 + $0x40] sm:$0xff]  ;;  %v1467_v12 = vld [vmem:[%s1745_s27 + $0x48] sm:$0xff]  ;;  %v1461_v17 = vld [vmem:[%s1745_s27 + $0x18] sm:$0xff] }
  0x21   : > { %690 = vmatpush.bf16.msra.mxu0 %v1496_v2  ;;  %1517 = vmatpush.bf16.msra.mxu1 %v1496_v2  ;;  %v1474_v13 = vld [vmem:[%s1745_s27 + $0x80] sm:$0xff]  ;;  %v1475_v16 = vld [vmem:[%s1745_s27 + $0x88] sm:$0xff]  ;;  %v1469_v18 = vld [vmem:[%s1745_s27 + $0x58] sm:$0xff] }
  0x22   : > { %1518 = vmatpush.bf16.msra.mxu2 %v1496_v2  ;;  %1519 = vmatpush.bf16.msra.mxu3 %v1496_v2  ;;  %v1476_v19 = vld [vmem:[%s1745_s27 + $0x90] sm:$0xff]  ;;  %v1482_v20 = vld [vmem:[%s1745_s27 + $0xc0] sm:$0xff]  ;;  %v1477_v23 = vld [vmem:[%s1745_s27 + $0x98] sm:$0xff] }
  0x23   : > { %v1462_v21 = vld [vmem:[%s1745_s27 + $0x20] sm:$0xff]  ;;  %v1483_v24 = vld [vmem:[%s1745_s27 + $0xc8] sm:$0xff]  ;;  %v1484_v28 = vld [vmem:[%s1745_s27 + $0xd0] sm:$0xff] }
  0x24   : > { %v1470_v22 = vld [vmem:[%s1745_s27 + $0x60] sm:$0xff]  ;;  %v1463_v25 = vld [vmem:[%s1745_s27 + $0x28] sm:$0xff]  ;;  %v1464_v29 = vld [vmem:[%s1745_s27 + $0x30] sm:$0xff] }
  0x25   : > { %691 = vmatpush.bf16.msra.mxu0 %v1495_v3  ;;  %1520 = vmatpush.bf16.msra.mxu1 %v1495_v3  ;;  %v1471_v26 = vld [vmem:[%s1745_s27 + $0x68] sm:$0xff]  ;;  %v1478_v27 = vld [vmem:[%s1745_s27 + $0xa0] sm:$0xff]  ;;  %v1472_v30 = vld [vmem:[%s1745_s27 + $0x70] sm:$0xff] }
  0x26   : > { %1521 = vmatpush.bf16.msra.mxu2 %v1495_v3  ;;  %1522 = vmatpush.bf16.msra.mxu3 %v1495_v3  ;;  %v1479_v31 = vld [vmem:[%s1745_s27 + $0xa8] sm:$0xff]  ;;  %v1485_v32 = vld [vmem:[%s1745_s27 + $0xd8] sm:$0xff]  ;;  %v1480_v35 = vld [vmem:[%s1745_s27 + $0xb0] sm:$0xff] }
  0x27   : > { %v1465_v33 = vld [vmem:[%s1745_s27 + $0x38] sm:$0xff]  ;;  %v1486_v36 = vld [vmem:[%s1745_s27 + $0xe0] sm:$0xff]  ;;  %v1487_v41 = vld [vmem:[%s1745_s27 + $0xe8] sm:$0xff] }
  0x28   : > { %v1473_v34 = vld [vmem:[%s1745_s27 + $0x78] sm:$0xff]  ;;  %v1805_v39 = vld [vmem:[%s2056_s3] ss:$0 sm:$0xff]  ;;  %v1488_v53 = vld [vmem:[%s1745_s27 + $0xf0] sm:$0xff] }
  0x29   : > { %692 = vmatpush.bf16.msra.mxu0 %v1494_v4  ;;  %1523 = vmatpush.bf16.msra.mxu1 %v1494_v4  ;;  %v1481_v40 = vld [vmem:[%s1745_s27 + $0xb8] sm:$0xff] }
  0x2a   : > { %1524 = vmatpush.bf16.msra.mxu2 %v1494_v4  ;;  %1525 = vmatpush.bf16.msra.mxu3 %v1494_v4  ;;  %v1489_v0 = vld [vmem:[%s1745_s27 + $0xf8] sm:$0xff] }
  0x2d   : > { %693 = vmatpush.bf16.msra.mxu0 %v1493_v5  ;;  %1526 = vmatpush.bf16.msra.mxu1 %v1493_v5 }
  0x2e   : > { %1527 = vmatpush.bf16.msra.mxu2 %v1493_v5  ;;  %1528 = vmatpush.bf16.msra.mxu3 %v1493_v5 }
  0x31   : > { %694 = vmatpush.bf16.msra.mxu0 %v1492_v6  ;;  %1529 = vmatpush.bf16.msra.mxu1 %v1492_v6 }
  0x32   : > { %1530 = vmatpush.bf16.msra.mxu2 %v1492_v6  ;;  %1531 = vmatpush.bf16.msra.mxu3 %v1492_v6 }
  0x35   : > { %695 = vmatpush.bf16.msra.mxu0 %v1491_v7  ;;  %1532 = vmatpush.bf16.msra.mxu1 %v1491_v7 }
  0x36   : > { %1533 = vmatpush.bf16.msra.mxu2 %v1491_v7  ;;  %1534 = vmatpush.bf16.msra.mxu3 %v1491_v7 }
  0x39   : > { %696 = vmatpush.bf16.msra.mxu0 %v1490_v8  ;;  %1535 = vmatpush.bf16.msra.mxu1 %v1490_v8 }
  0x3a   : > { %1536 = vmatpush.bf16.msra.mxu2 %v1490_v8  ;;  %1537 = vmatpush.bf16.msra.mxu3 %v1490_v8 }
  0x3c   : > { %697 = vmatmul.bf16.vlgmr.msra.gmra.mxu0 %v1458_v9  ;;  %737 = vmatmul.bf16.vlgmr.msra.gmra.mxu1 %v1466_v10 }
  0x3d   : > { %777 = vmatmul.bf16.vlgmr.msra.gmra.mxu2 %v1474_v13  ;;  %817 = vmatmul.bf16.vlgmr.msra.gmra.mxu3 %v1482_v20 }
  0x4c   : > { %702 = vmatmul.bf16.gmra.mxu0 %v1459_v11  ;;  %742 = vmatmul.bf16.gmra.mxu1 %v1467_v12 }
  0x4d   : > { %782 = vmatmul.bf16.gmra.mxu2 %v1475_v16  ;;  %822 = vmatmul.bf16.gmra.mxu3 %v1483_v24 }
  0x5c   : > { %707 = vmatmul.bf16.gmra.mxu0 %v1460_v14  ;;  %747 = vmatmul.bf16.gmra.mxu1 %v1468_v15 }
  0x5d   : > { %787 = vmatmul.bf16.gmra.mxu2 %v1476_v19  ;;  %827 = vmatmul.bf16.gmra.mxu3 %v1484_v28 }
  0x6c   : > { %712 = vmatmul.bf16.gmra.mxu0 %v1461_v17  ;;  %752 = vmatmul.bf16.gmra.mxu1 %v1469_v18 }
  0x6d   : > { %792 = vmatmul.bf16.gmra.mxu2 %v1477_v23  ;;  %832 = vmatmul.bf16.gmra.mxu3 %v1485_v32 }
  0x7c   : > { %717 = vmatmul.bf16.gmra.mxu0 %v1462_v21  ;;  %757 = vmatmul.bf16.gmra.mxu1 %v1470_v22 }
  0x7d   : > { %797 = vmatmul.bf16.gmra.mxu2 %v1478_v27  ;;  %837 = vmatmul.bf16.gmra.mxu3 %v1486_v36 }
  0x8c   : > { %722 = vmatmul.bf16.gmra.mxu0 %v1463_v25  ;;  %762 = vmatmul.bf16.gmra.mxu1 %v1471_v26 }
  0x8d   : > { %802 = vmatmul.bf16.gmra.mxu2 %v1479_v31  ;;  %842 = vmatmul.bf16.gmra.mxu3 %v1487_v41 }
  0x9c   : > { %727 = vmatmul.bf16.gmra.mxu0 %v1464_v29  ;;  %767 = vmatmul.bf16.gmra.mxu1 %v1472_v30 }
  0x9d   : > { %807 = vmatmul.bf16.gmra.mxu2 %v1480_v35  ;;  %847 = vmatmul.bf16.gmra.mxu3 %v1488_v53 }
  0xac   : > { %732 = vmatmul.bf16.gmra.mxu0 %v1465_v33  ;;  %772 = vmatmul.bf16.gmra.mxu1 %v1473_v34 }
  0xad   : > { %812 = vmatmul.bf16.gmra.mxu2 %v1481_v40  ;;  %852 = vmatmul.bf16.gmra.mxu3 %v1489_v0 }
  0xb9   : > { %v698_v37 = vpop.f32.mrf.mxu0  ;;  %v1800_v38 = vpop.f32.mrf.mxu1 }
  0xba   : > { %v699_v42 = vadd.f32 %v1805_v39, %v698_v37 }
  0xbc   : > { %v858_v46 = vmax.f32 %v699_v42, 0.0 }
  0xc0   : > { %v1820_v60 = vpop.f32.mrf.mxu2  ;;  %v1836_v11 = vpop.f32.mrf.mxu3 }
  0xc1   : > { %v700_v43 = vpop.f32.mrf.mxu0  ;;  %v1810_v44 = vpop.f32.mrf.mxu1 }
  0xc2   : > { %v701_v45 = vadd.f32 %v1805_v39, %v700_v43 }
  0xc4   : > { %v859_v47 = vmax.f32 %v701_v45, 0.0 }
  0xc6   : > { %v923_v48 = vadd.f32 %v859_v47, %v858_v46 }
  0xc8   : > { %v1826_v4 = vpop.f32.mrf.mxu2  ;;  %v1842_v16 = vpop.f32.mrf.mxu3 }
  0xc9   : > { %v703_v49 = vpop.f32.mrf.mxu0  ;;  %v1814_v51 = vpop.f32.mrf.mxu1 }
  0xca   : > { %v704_v50 = vadd.f32 %v1805_v39, %v703_v49 }
  0xcc   : > { %v860_v52 = vmax.f32 %v704_v50, 0.0 }
  0xce   : > { %v924_v54 = vadd.f32 %v923_v48, %v860_v52 }
  0xd0   : > { %v1830_v7 = vpop.f32.mrf.mxu2  ;;  %v1848_v20 = vpop.f32.mrf.mxu3 }
  0xd1   : > { %v705_v55 = vpop.f32.mrf.mxu0  ;;  %v1818_v58 = vpop.f32.mrf.mxu1 }
  0xd2   : > { %v706_v56 = vadd.f32 %v1805_v39, %v705_v55 }
  0xd4   : > { %v861_v57 = vmax.f32 %v706_v56, 0.0 }
  0xd6   : > { %v925_v59 = vadd.f32 %v924_v54, %v861_v57 }
  0xd8   : > { %v1834_v10 = vpop.f32.mrf.mxu2  ;;  %v1854_v24 = vpop.f32.mrf.mxu3 }
  0xd9   : > { %v708_v61 = vpop.f32.mrf.mxu0  ;;  %v1824_v2 = vpop.f32.mrf.mxu1 }
  0xda   : > { %v709_v62 = vadd.f32 %v1805_v39, %v708_v61 }
  0xdc   : > { %v862_v63 = vmax.f32 %v709_v62, 0.0 }
  0xde   : > { %v926_v1 = vadd.f32 %v925_v59, %v862_v63 }
  0xe0   : > { %v1840_v14 = vpop.f32.mrf.mxu2  ;;  %v1863_v32 = vpop.f32.mrf.mxu3 }
  0xe1   : > { %v710_v3 = vpop.f32.mrf.mxu0  ;;  %v1828_v6 = vpop.f32.mrf.mxu1 }
  0xe2   : > { %v711_v26 = vadd.f32 %v1805_v39, %v710_v3 }
  0xe4   : > { %v863_v30 = vmax.f32 %v711_v26, 0.0 }
  0xe6   : > { %v927_v36 = vadd.f32 %v926_v1, %v863_v30 }
  0xe8   : > { %v1846_v19 = vpop.f32.mrf.mxu2  ;;  %v1874_v55 = vpop.f32.mrf.mxu3 }
  0xe9   : > { %v713_v5 = vpop.f32.mrf.mxu0  ;;  %v1832_v9 = vpop.f32.mrf.mxu1 }
  0xea   : > { %v714_v28 = vadd.f32 %v1805_v39, %v713_v5 }
  0xec   : > { %v864_v33 = vmax.f32 %v714_v28, 0.0  ;;  %v741_v28 = vadd.f32 %v1805_v39, %v1810_v44 }
  0xee   : > { %v928_v41 = vadd.f32 %v927_v36, %v864_v33  ;;  %v875_v36 = vmax.f32 %v741_v28, 0.0 }
  0xf0   : > { %v1852_v23 = vpop.f32.mrf.mxu2  ;;  %v1883_v26 = vpop.f32.mrf.mxu3 }
  0xf1   : > { %v715_v8 = vpop.f32.mrf.mxu0  ;;  %v1838_v13 = vpop.f32.mrf.mxu1 }
  0xf2   : > { %v716_v31 = vadd.f32 %v1805_v39, %v715_v8 }
  0xf4   : > { %v865_v37 = vmax.f32 %v716_v31, 0.0 }
  0xf6   : > { %v929_v46 = vadd.f32 %v928_v41, %v865_v37  ;;  %v746_v37 = vadd.f32 %v1805_v39, %v1818_v58  ;;  %v754_v58 = vadd.f32 %v1805_v39, %v1832_v9 }
  0xf8   : > { %v1860_v29 = vpop.f32.mrf.mxu2  ;;  %v877_v44 = vmax.f32 %v746_v37, 0.0 }
  0xf9   : > { %v718_v12 = vpop.f32.mrf.mxu0  ;;  %v1844_v17 = vpop.f32.mrf.mxu1 }
  0xfa   : > { %v719_v34 = vadd.f32 %v1805_v39, %v718_v12 }
  0xfc   : > { %v866_v42 = vmax.f32 %v719_v34, 0.0  ;;  %v744_v34 = vadd.f32 %v1805_v39, %v1814_v51  ;;  %v1897_v51 = vpop.f32.mrf.mxu3 }
  0xfe   : > { %v930_v50 = vadd.f32 %v929_v46, %v866_v42  ;;  %v876_v41 = vmax.f32 %v744_v34, 0.0  ;;  %v749_v42 = vadd.f32 %v1805_v39, %v1824_v2 }
 0x100   : > { %v1871_v49 = vpop.f32.mrf.mxu2 }
 0x101   : > { %v720_v15 = vpop.f32.mrf.mxu0  ;;  %v1850_v22 = vpop.f32.mrf.mxu1 }
 0x102   : > { %v721_v40 = vadd.f32 %v1805_v39, %v720_v15 }
 0x104   : > { %v867_v47 = vmax.f32 %v721_v40, 0.0 }
 0x106   : > { %v931_v56 = vadd.f32 %v930_v50, %v867_v47  ;;  %v751_v47 = vadd.f32 %v1805_v39, %v1828_v6  ;;  %v878_v50 = vmax.f32 %v749_v42, 0.0 }
 0x108   : > { %v1878_v15 = vpop.f32.mrf.mxu2 }
 0x109   : > { %v723_v18 = vpop.f32.mrf.mxu0  ;;  %v1857_v27 = vpop.f32.mrf.mxu1 }
 0x10a   : > { %v724_v43 = vadd.f32 %v1805_v39, %v723_v18  ;;  %v739_v18 = vadd.f32 %v1805_v39, %v1800_v38  ;;  %v764_v9 = vadd.f32 %v1805_v39, %v1857_v27 }
 0x10c   : > { %v868_v52 = vmax.f32 %v724_v43, 0.0  ;;  %v874_v33 = vmax.f32 %v739_v18, 0.0  ;;  %v884_v18 = vmax.f32 %v764_v9, 0.0 }
 0x10e   : > { %v932_v61 = vadd.f32 %v931_v56, %v868_v52  ;;  %v880_v56 = vmax.f32 %v754_v58, 0.0 }
 0x110   : > { %v1893_v46 = vpop.f32.mrf.mxu2 }
 0x111   : > { %v725_v21 = vpop.f32.mrf.mxu0  ;;  %v1868_v45 = vpop.f32.mrf.mxu1 }
 0x112   : > { %v726_v48 = vadd.f32 %v1805_v39, %v725_v21 }
 0x114   : > { %v869_v57 = vmax.f32 %v726_v48, 0.0 }
 0x116   : > { %v933_v0 = vadd.f32 %v932_v61, %v869_v57  ;;  %v759_v57 = vadd.f32 %v1805_v39, %v1844_v17 }
 0x119   : > { %v728_v25 = vpop.f32.mrf.mxu0  ;;  %v768_v3 = vpop.f32.mrf.mxu1 }
 0x11a   : > { %v729_v53 = vadd.f32 %v1805_v39, %v728_v25 }
 0x11c   : > { %v870_v62 = vmax.f32 %v729_v53, 0.0  ;;  %v879_v53 = vmax.f32 %v751_v47, 0.0 }
 0x11e   : > { %v934_v5 = vadd.f32 %v933_v0, %v870_v62  ;;  %v761_v62 = vadd.f32 %v1805_v39, %v1850_v22  ;;  %v805_v0 = vpop.f32.mrf.mxu2 }
 0x121   : > { %v730_v35 = vpop.f32.mrf.mxu0  ;;  %v770_v40 = vpop.f32.mrf.mxu1 }
 0x122   : > { %v731_v59 = vadd.f32 %v1805_v39, %v730_v35 }
 0x124   : > { %v871_v1 = vmax.f32 %v731_v59, 0.0 }
 0x126   : > { %v935_v21 = vadd.f32 %v934_v5, %v871_v1  ;;  %v882_v1 = vmax.f32 %v759_v57, 0.0 }
 0x129   : > { %v733_v54 = vpop.f32.mrf.mxu0  ;;  %v773_v61 = vpop.f32.mrf.mxu1 }
 0x12a   : > { %v734_v63 = vadd.f32 %v1805_v39, %v733_v54  ;;  %v756_v54 = vadd.f32 %v1805_v39, %v1838_v13  ;;  %v883_v13 = vmax.f32 %v761_v62, 0.0  ;;  %v774_v27 = vadd.f32 %v1805_v39, %v773_v61 }
 0x12c   : > { %v872_v8 = vmax.f32 %v734_v63, 0.0  ;;  %v881_v6 = vmax.f32 %v756_v54, 0.0  ;;  %v888_v42 = vmax.f32 %v774_v27, 0.0 }
 0x12e   : > { %v936_v30 = vadd.f32 %v935_v21, %v872_v8  ;;  %v1909_v8 = vpop.f32.mrf.mxu3  ;;  %v769_v21 = vadd.f32 %v1805_v39, %v768_v3  ;;  %v779_v3 = vadd.f32 %v1805_v39, %v1820_v60  ;;  %v789_v60 = vadd.f32 %v1805_v39, %v1840_v14 }
 0x12f   : > { %v799_v14 = vadd.f32 %v1805_v39, %v1871_v49 }
 0x130   : > { %v890_v47 = vmax.f32 %v779_v3, 0.0 }
 0x131   : > { %v735_v12 = vpop.f32.mrf.mxu0 }
 0x132   : > { %v736_v25 = vadd.f32 %v1805_v39, %v735_v12  ;;  %v766_v12 = vadd.f32 %v1805_v39, %v1868_v45 }
 0x134   : > { %v873_v31 = vmax.f32 %v736_v25, 0.0  ;;  %v885_v28 = vmax.f32 %v766_v12, 0.0 }
 0x136   : > { %v937_v35 = vadd.f32 %v936_v30, %v873_v31  ;;  %v771_v30 = vadd.f32 %v1805_v39, %v770_v40  ;;  %v775_v31 = vpop.f32.mrf.mxu1  ;;  %v1917_v45 = vpop.f32.mrf.mxu3  ;;  %v781_v40 = vadd.f32 %v1805_v39, %v1826_v4 }
 0x138   : > { %v938_v38 = vadd.f32 %v937_v35, %v874_v33  ;;  %v886_v33 = vmax.f32 %v769_v21, 0.0  ;;  %v808_v35 = vpop.f32.mrf.mxu2  ;;  %v887_v37 = vmax.f32 %v771_v30, 0.0  ;;  %v891_v58 = vmax.f32 %v781_v40, 0.0 }
 0x139   : > { %v898_v21 = vmax.f32 %v799_v14, 0.0  ;;  %v809_v49 = vadd.f32 %v1805_v39, %v808_v35  ;;  %v821_v35 = vadd.f32 %v1805_v39, %v1842_v16  ;;  %v831_v16 = vadd.f32 %v1805_v39, %v1874_v55 }
 0x13a   : > { %v939_v43 = vadd.f32 %v938_v38, %v875_v36  ;;  %v776_v38 = vadd.f32 %v1805_v39, %v775_v31  ;;  %v841_v55 = vadd.f32 %v1805_v39, %v1917_v45 }
 0x13c   : > { %v940_v48 = vadd.f32 %v939_v43, %v876_v41 }
 0x13e   : > { %v941_v52 = vadd.f32 %v940_v48, %v877_v44  ;;  %v889_v44 = vmax.f32 %v776_v38, 0.0  ;;  %v784_v48 = vadd.f32 %v1805_v39, %v1830_v7  ;;  %v1929_v57 = vpop.f32.mrf.mxu3  ;;  %v894_v7 = vmax.f32 %v789_v60, 0.0 }
 0x140   : > { %v942_v2 = vadd.f32 %v941_v52, %v878_v50  ;;  %v786_v52 = vadd.f32 %v1805_v39, %v1834_v10  ;;  %v810_v54 = vpop.f32.mrf.mxu2 }
 0x141   : > { %v811_v27 = vadd.f32 %v1805_v39, %v810_v54 }
 0x142   : > { %v943_v59 = vadd.f32 %v942_v2, %v879_v53  ;;  %v892_v2 = vmax.f32 %v784_v48, 0.0  ;;  %v893_v4 = vmax.f32 %v786_v52, 0.0  ;;  %v907_v52 = vmax.f32 %v821_v35, 0.0 }
 0x144   : > { %v944_v63 = vadd.f32 %v943_v59, %v880_v56  ;;  %v791_v59 = vadd.f32 %v1805_v39, %v1846_v19  ;;  %v801_v19 = vadd.f32 %v1805_v39, %v1878_v15 }
 0x146   : > { %v945_v5 = vadd.f32 %v944_v63, %v881_v6  ;;  %v794_v6 = vadd.f32 %v1805_v39, %v1852_v23  ;;  %v895_v10 = vmax.f32 %v791_v59, 0.0  ;;  %v796_v63 = vadd.f32 %v1805_v39, %v1860_v29 }
 0x147   : > { %v804_v23 = vadd.f32 %v1805_v39, %v1893_v46  ;;  %v806_v29 = vadd.f32 %v1805_v39, %v805_v0  ;;  %v819_v0 = vadd.f32 %v1805_v39, %v1836_v11  ;;  %v829_v11 = vadd.f32 %v1805_v39, %v1863_v32 }
 0x148   : > { %v946_v17 = vadd.f32 %v945_v5, %v882_v1  ;;  %v896_v9 = vmax.f32 %v794_v6, 0.0  ;;  %v897_v12 = vmax.f32 %v796_v63, 0.0  ;;  %v911_v6 = vmax.f32 %v831_v16, 0.0 }
 0x149   : > { %v900_v30 = vmax.f32 %v804_v23, 0.0  ;;  %v906_v48 = vmax.f32 %v819_v0, 0.0  ;;  %v839_v32 = vadd.f32 %v1805_v39, %v1909_v8 }
 0x14a   : > { %v947_v25 = vadd.f32 %v946_v17, %v883_v13  ;;  %v813_v13 = vpop.f32.mrf.mxu2 }
 0x14b   : > { %v814_v38 = vadd.f32 %v1805_v39, %v813_v13 }
 0x14c   : > { %v948_v22 = vadd.f32 %v947_v25, %v884_v18  ;;  %v845_v18 = vpop.f32.mrf.mxu3 }
 0x14e   : > { %v949_v34 = vadd.f32 %v948_v22, %v885_v28  ;;  %v899_v28 = vmax.f32 %v801_v19, 0.0 }
 0x150   : > { %v950_v36 = vadd.f32 %v949_v34, %v886_v33  ;;  %v901_v33 = vmax.f32 %v806_v29, 0.0 }
 0x152   : > { %v951_v41 = vadd.f32 %v950_v36, %v887_v37  ;;  %v815_v15 = vpop.f32.mrf.mxu2  ;;  %v902_v37 = vmax.f32 %v809_v49, 0.0 }
 0x154   : > { %v952_v43 = vadd.f32 %v951_v41, %v888_v42  ;;  %v848_v3 = vpop.f32.mrf.mxu3  ;;  %v903_v41 = vmax.f32 %v811_v27, 0.0  ;;  %v816_v42 = vadd.f32 %v1805_v39, %v815_v15 }
 0x155   : > { %v849_v8 = vadd.f32 %v1805_v39, %v848_v3 }
 0x156   : > { %v953_v50 = vadd.f32 %v952_v43, %v889_v44  ;;  %v904_v43 = vmax.f32 %v814_v38, 0.0 }
 0x158   : > { %v954_v53 = vadd.f32 %v953_v50, %v890_v47  ;;  %v905_v47 = vmax.f32 %v816_v42, 0.0  ;;  %v824_v50 = vadd.f32 %v1805_v39, %v1848_v20  ;;  %v834_v20 = vadd.f32 %v1805_v39, %v1883_v26 }
 0x159   : > { %v844_v26 = vadd.f32 %v1805_v39, %v1929_v57 }
 0x15a   : > { %v955_v56 = vadd.f32 %v954_v53, %v891_v58  ;;  %v826_v53 = vadd.f32 %v1805_v39, %v1854_v24  ;;  %v908_v60 = vmax.f32 %v824_v50, 0.0  ;;  %v836_v24 = vadd.f32 %v1805_v39, %v1897_v51 }
 0x15b   : > { %v846_v51 = vadd.f32 %v1805_v39, %v845_v18 }
 0x15c   : > { %v956_v61 = vadd.f32 %v955_v56, %v892_v2  ;;  %v850_v2 = vpop.f32.mrf.mxu3 }
 0x15d   : > { %v917_v23 = vmax.f32 %v846_v51, 0.0 }
 0x15e   : > { %v957_v62 = vadd.f32 %v956_v61, %v893_v4  ;;  %v909_v4 = vmax.f32 %v826_v53, 0.0  ;;  %v910_v61 = vmax.f32 %v829_v11, 0.0 }
 0x160   : > { %v958_v1 = vadd.f32 %v957_v62, %v894_v7 }
 0x162   : > { %v959_v5 = vadd.f32 %v958_v1, %v895_v10  ;;  %v912_v10 = vmax.f32 %v834_v20, 0.0 }
 0x164   : > { %v960_v17 = vadd.f32 %v959_v5, %v896_v9  ;;  %v853_v1 = vpop.f32.mrf.mxu3  ;;  %v913_v9 = vmax.f32 %v836_v24, 0.0  ;;  %v914_v5 = vmax.f32 %v839_v32, 0.0 }
 0x166   : > { %v961_v25 = vadd.f32 %v960_v17, %v897_v12  ;;  %v915_v12 = vmax.f32 %v841_v55, 0.0  ;;  %v916_v17 = vmax.f32 %v844_v26, 0.0 }
 0x168   : > { %v962_v22 = vadd.f32 %v961_v25, %v898_v21 }
 0x16a   : > { %v963_v31 = vadd.f32 %v962_v22, %v899_v28  ;;  %v851_v28 = vadd.f32 %v1805_v39, %v850_v2  ;;  %v918_v22 = vmax.f32 %v849_v8, 0.0 }
 0x16c   : > { %v964_v34 = vadd.f32 %v963_v31, %v900_v30  ;;  %v855_v29 = vpop.f32.mrf.mxu3  ;;  %v854_v30 = vadd.f32 %v1805_v39, %v853_v1  ;;  %v919_v57 = vmax.f32 %v851_v28, 0.0 }
 0x16d   : > { %v856_v49 = vadd.f32 %v1805_v39, %v855_v29 }
 0x16e   : > { %v965_v36 = vadd.f32 %v964_v34, %v901_v33  ;;  %v920_v18 = vmax.f32 %v854_v30, 0.0 }
 0x16f   : > { %v921_v27 = vmax.f32 %v856_v49, 0.0 }
 0x170   : > { %v966_v46 = vadd.f32 %v965_v36, %v902_v37 }
 0x172   : > { %v967_v40 = vadd.f32 %v966_v46, %v903_v41  ;;  %v922_v41 = vld [vmem:[#allocation2] sm:$0x1] }
 0x174   : > { %v968_v44 = vadd.f32 %v967_v40, %v904_v43 }
 0x176   : > { %v969_v58 = vadd.f32 %v968_v44, %v905_v47 }
 0x178   : > { %v970_v54 = vadd.f32 %v969_v58, %v906_v48 }
 0x17a   : > { %v971_v56 = vadd.f32 %v970_v54, %v907_v52 }
 0x17c   : > { %v972_v59 = vadd.f32 %v971_v56, %v908_v60 }
 0x17e   : > { %v973_v7 = vadd.f32 %v972_v59, %v909_v4 }
 0x180   : > { %v974_v62 = vadd.f32 %v973_v7, %v910_v61 }
 0x182   : > { %v975_v63 = vadd.f32 %v974_v62, %v911_v6 }
 0x184   : > { %v976_v14 = vadd.f32 %v975_v63, %v912_v10 }
 0x186   : > { %v977_v13 = vadd.f32 %v976_v14, %v913_v9 }
 0x188   : > { %v978_v19 = vadd.f32 %v977_v13, %v914_v5 }
 0x18a   : > { %v979_v21 = vadd.f32 %v978_v19, %v915_v12 }
 0x18c   : > { %v980_v25 = vadd.f32 %v979_v21, %v916_v17 }
 0x18e   : > { %v981_v45 = vadd.f32 %v980_v25, %v917_v23 }
 0x190   : > { %v982_v31 = vadd.f32 %v981_v45, %v918_v22 }
 0x192   : > { %v983_v33 = vadd.f32 %v982_v31, %v919_v57 }
 0x194   : > { %v984_v34 = vadd.f32 %v983_v33, %v920_v18 }
 0x196   : > { %v985_v15 = vadd.f32 %v984_v34, %v921_v27 }
 0x198   : > { %v986_v36 = vrot.slane %v985_v15, 4 }
 0x19a   : > { %v987_v37 = vadd.f32 %v986_v36, %v985_v15 }
 0x19c   : > { %v988_v38 = vrot.slane %v987_v37, 2 }
 0x19e   : > { %v989_v3 = vadd.f32 %v988_v38, %v987_v37 }
 0x1a0   : > { %v990_v46 = vrot.slane %v989_v3, 1 }
 0x1a2   : > { %v991_v42 = vadd.f32 %v990_v46, %v989_v3  ;;  %997 = sbr.rel (%p1391_p10) target bundleno = 723 (0x2d3), region = 68 }
 0x1a4   : > { %v992_v0 = vadd.f32 %v991_v42, %v922_v41 }
 0x1a6   : > { %993 = vst [vmem:[#allocation2] sm:$0x1] %v992_v0 }
 0x1a7   : > { %v1505_v39 = vld [vmem:[%s2057_s4 + $0x38] sm:$0xff]  ;;  %v1504_v40 = vld [vmem:[%s2057_s4 + $0x30] sm:$0xff]  ;;  %v1503_v44 = vld [vmem:[%s2057_s4 + $0x28] sm:$0xff]  ;;  %v1019_v20 = vstv %s1017_s20 }
 0x1a8   : > { %1069 = vmatpush.bf16.msra.mxu0 %v1505_v39  ;;  %v1513_v43 = vld [vmem:[%s2060_s7 + $0x38] sm:$0xff]  ;;  %v1512_v35 = vld [vmem:[%s2060_s7 + $0x30] sm:$0xff]  ;;  %v1511_v47 = vld [vmem:[%s2060_s7 + $0x28] sm:$0xff] }
 0x1a9   : > { %1151 = vmatpush.bf16.msra.mxu1 %v1513_v43  ;;  %v1502_v48 = vld [vmem:[%s2057_s4 + $0x20] sm:$0xff]  ;;  %v1501_v58 = vld [vmem:[%s2057_s4 + $0x18] sm:$0xff]  ;;  %v1500_v53 = vld [vmem:[%s2057_s4 + $0x10] sm:$0xff] }
 0x1aa   : > { %v1510_v50 = vld [vmem:[%s2060_s7 + $0x20] sm:$0xff]  ;;  %v1509_v52 = vld [vmem:[%s2060_s7 + $0x18] sm:$0xff]  ;;  %v1508_v54 = vld [vmem:[%s2060_s7 + $0x10] sm:$0xff] }
 0x1ab   : > { %v1499_v2 = vld [vmem:[%s2057_s4 + $0x8] sm:$0xff]  ;;  %v1498_v56 = vld [vmem:[%s2057_s4] sm:$0xff] }
 0x1ac   : > { %1070 = vmatpush.bf16.msra.mxu0 %v1504_v40  ;;  %v1507_v16 = vld [vmem:[%s2060_s7 + $0x8] sm:$0xff]  ;;  %v1506_v59 = vld [vmem:[%s2060_s7] sm:$0xff] }
 0x1ad   : > { %1152 = vmatpush.bf16.msra.mxu1 %v1512_v35  ;;  %v998_v60 = vld [vmem:[#allocation2] sm:$0x1] }
 0x1ae   : > { %v999_v11 = vmul.f32 0.0009765625, %v998_v60  ;;  %v1018_v61 = vld [vmem:[%s2058_s5] sm:$0x1] }
 0x1af   : > { %v1020_v7 = vmul.f32 %v1019_v20, %v1018_v61  ;;  %v1082_v24 = vld [vmem:[%s2059_s6] sm:$0x1] }
 0x1b0   : > { %1071 = vmatpush.bf16.msra.mxu0 %v1503_v44  ;;  %v1000_v4 = vpack.c.bf16 %v999_v11, %v999_v11  ;;  %v1102_v9 = vld [vmem:[%s2061_s8] sm:$0x1] }
 0x1b1   : > { %1153 = vmatpush.bf16.msra.mxu1 %v1511_v47 }
 0x1b4   : > { %1072 = vmatpush.bf16.msra.mxu0 %v1502_v48 }
 0x1b5   : > { %1154 = vmatpush.bf16.msra.mxu1 %v1510_v50 }
 0x1b8   : > { %1073 = vmatpush.bf16.msra.mxu0 %v1501_v58 }
 0x1b9   : > { %1155 = vmatpush.bf16.msra.mxu1 %v1509_v52 }
 0x1bc   : > { %1074 = vmatpush.bf16.msra.mxu0 %v1500_v53 }
 0x1bd   : > { %1156 = vmatpush.bf16.msra.mxu1 %v1508_v54 }
 0x1c0   : > { %1075 = vmatpush.bf16.msra.mxu0 %v1499_v2 }
 0x1c1   : > { %1157 = vmatpush.bf16.msra.mxu1 %v1507_v16 }
 0x1c4   : > { %1076 = vmatpush.bf16.msra.mxu0 %v1498_v56 }
 0x1c5   : > { %1158 = vmatpush.bf16.msra.mxu1 %v1506_v59 }
 0x1c7   : > { %1077 = vmatmul.bf16.vlgmr.msra.gmra.mxu0 %v1000_v4 }
 0x244   : > { %v1078_v6 = vpop.f32.mrf.mxu0 }
 0x245   : > { %v1079_v62 = vadd.f32 %v1078_v6, %v1020_v7 }
 0x247   : > { %v1083_v10 = vadd.f32 %v1082_v24, %v1079_v62 }
 0x249   : > { %v1084_v32 = vmax.f32 %v1083_v10, 0.0 }
 0x24b   : > { %v1085_v63 = vpack.c.bf16 %v1084_v32, %v1084_v32 }
 0x24c   : > { %v1080_v1 = vpop.f32.mrf.mxu0 }
 0x24d   : > { %1159 = vmatmul.bf16.vlgmr.msra.gmra.mxu1 %v1085_v63 }
 0x2ca   : > { %v1160_v55 = vpop.f32.mrf.mxu1 }
 0x2cb   : > { %v1161_v14 = vadd.f32 %v1160_v55, %v1102_v9 }
 0x2cd   : > { %1165 = vst [vmem:[%s1164_s29] sm:$0x1] %v1161_v14 }
 0x2d2   : > { %v1162_v5 = vpop.f32.mrf.mxu1 }
 0x2d3 PF: > { %s20_s13 = sadd.s32 1, %s1648_s13   ;;  %s2063_s30 = smov %s1640_s11 }
 0x2d4   : > { %p17_p11 = scmp.ge.s32.totalorder %s20_s13, 6   ;;  %s2064_s10 = smov %s1644_s12 }
 0x2d5   : > { %s2065_s11 = smov %s2068_s15  ;;  %s2066_s12 = smov %s2072_s16 }
 0x2d6   :  { %19 = sbr.rel (!%p17_p11) target bundleno = 3 (0x3), region = 96 }
 0x2db   :  { %1177 = vsyncpa [#allocation4], 1 }
 0x2dc   :  { %1179 = vsyncpa [#allocation4 + $0x1], 1 }

</bundles_post_ra>
